<compile_context>
chip_gen: v5e
topology: v5e:2x2
jax: 0.10.0
libtpu: 0.0.40
codegen_flags: <defaults>
</compile_context>

<pallas_src>
import math
from functools import partial

import jax
import jax.numpy as jnp
from jax.experimental import pallas as pl
from jax.experimental.pallas import tpu as pltpu

LOG_SIG_MAX = 2.0
LOG_SIG_MIN = -20.0


def _round_up(x, m):
    return ((x + m - 1) // m) * m


# ----------------------------- kernel ---------------------------------------

def gaussian_policy_kernel(half_p,
                           x_ref, w1_ref, b1_ref, w2_ref, b2_ref,
                           wh_ref, bh_ref, out_ref):
    x = x_ref[...]                                               # bf16 tile

    h1 = jnp.dot(x, w1_ref[...], preferred_element_type=jnp.float32) + b1_ref[...]
    h1 = jnp.maximum(h1, 0.0).astype(jnp.bfloat16)               # ReLU (VPU) -> bf16 for MXU

    h2 = jnp.dot(h1, w2_ref[...], preferred_element_type=jnp.float32) + b2_ref[...]
    h2 = jnp.maximum(h2, 0.0).astype(jnp.bfloat16)

    # Fused head: lanes [0, half_p) = mean head, [half_p, 2*half_p) = log_std
    # head (each zero-padded to its own 128-lane block).
    heads = jnp.dot(h2, wh_ref[...], preferred_element_type=jnp.float32) + bh_ref[...]

    # Slices are 128-lane aligned (half_p % 128 == 0): plain full-vreg ops,
    # no iota/compare/select needed. clip(0)=0 on pad lanes is a no-op.
    out_ref[:, :half_p] = heads[:, :half_p].astype(out_ref.dtype)
    out_ref[:, half_p:] = jnp.clip(heads[:, half_p:],
                                   LOG_SIG_MIN, LOG_SIG_MAX).astype(out_ref.dtype)


# ----------------------------- wrapper ---------------------------------------

def gaussian_policy_forward(state, packed, *, tile_b_max=512):
    """state: [B, num_inputs] f32. packed: dict from pack_params()."""
    B, num_inputs = state.shape
    A = packed["num_actions"]
    half_p = packed["half_p"]
    in_p, h_p = packed["w1"].shape
    n_p = packed["w_heads"].shape[1]

    # --- batch tiling --------------------------------------------------------
    # Big tiles amortize the ~0.35 us per-grid-step overhead; but keep >=2 grid
    # steps whenever the batch allows so the "parallel" axis can shard across
    # v7x's two TensorCores (no-op on v5e/v6e, which have a single TC).
    B_sub = _round_up(B, 8)
    tile_b = min(tile_b_max, B_sub)
    if B_sub >= 16:
        tile_b = min(tile_b, _round_up(pl.cdiv(B_sub, 2), 8))
    B_pad = _round_up(B_sub, tile_b)
    grid = (B_pad // tile_b,)

    # Single jnp.pad (no zeros + dynamic-update-slice round trip through HBM);
    # cast the activations to bf16 so the MXU runs at native rate and the x DMA
    # is halved.  If the state layout is fixed, hoist the feature-dim pad out
    # of the training/eval loop entirely.
    x = jnp.pad(state.astype(jnp.bfloat16),
                ((0, B_pad - B), (0, in_p - num_inputs)))

    # --- cost / VMEM bookkeeping --------------------------------------------
    bytes_weights = sum(packed[k].size * packed[k].dtype.itemsize
                        for k in ("w1", "w2", "w_heads"))
    bytes_biases = sum(packed[k].size * packed[k].dtype.itemsize
                       for k in ("b1", "b2", "b_heads"))
    flops = 2 * B_pad * (in_p * h_p + h_p * h_p + h_p * n_p)
    bytes_accessed = (B_pad * in_p * x.dtype.itemsize      # x in
                      + bytes_weights + bytes_biases       # resident params
                      + B_pad * n_p * 4)                   # f32 out
    cost = pl.CostEstimate(flops=flops, transcendentals=0,
                           bytes_accessed=bytes_accessed)

    def _resident_spec(shape, single_buffer):
        # Grid-invariant block (index_map -> (0, 0)): weights stay VMEM
        # resident.  Buffered(1) drops the pointless second buffer, halving
        # resident VMEM — matters on v7x (64 MiB physical / 32 MiB scoped
        # default) once hidden_dim grows to production sizes.  h_p is kept as
        # one full-width block so v6e/v7x's 256-wide MXU passes stay full.
        if single_buffer:
            return pl.BlockSpec(shape, lambda i: (0, 0),
                                pipeline_mode=pl.Buffered(buffer_count=1))
        return pl.BlockSpec(shape, lambda i: (0, 0))

    def _build(single_buffer_weights):
        weight_bufs = 1 if single_buffer_weights else 2
        vmem_est = (weight_bufs * (bytes_weights + bytes_biases)
                    + 2 * tile_b * (in_p * 2 + n_p * 4))   # double-buffered x/out tiles
        # Explicit guardrail: never assume v6e's 128 MiB; cap at v7x's 64 MiB.
        vmem_limit = int(min(64 * 2**20, max(32 * 2**20, 2 * vmem_est)))
        return pl.pallas_call(
            partial(gaussian_policy_kernel, half_p),
            out_shape=jax.ShapeDtypeStruct((B_pad, n_p), jnp.float32),
            grid=grid,
            in_specs=[
                pl.BlockSpec((tile_b, in_p), lambda i: (i, 0)),          # state tile
                _resident_spec((in_p, h_p), single_buffer_weights),      # W1
                _resident_spec((1, h_p), single_buffer_weights),         # b1
                _resident_spec((h_p, h_p), single_buffer_weights),       # W2
                _resident_spec((1, h_p), single_buffer_weights),         # b2
                _resident_spec((h_p, n_p), single_buffer_weights),       # W_heads
                _resident_spec((1, n_p), single_buffer_weights),         # b_heads
            ],
            # Lane-dense output slab (multiple of 128 lanes): unmasked vst.
            out_specs=pl.BlockSpec((tile_b, n_p), lambda i: (i, 0)),
            compiler_params=pltpu.CompilerParams(
                dimension_semantics=("parallel",),
                vmem_limit_bytes=vmem_limit,
            ),
            cost_estimate=cost,
        )

    args = (x, packed["w1"], packed["b1"], packed["w2"], packed["b2"],
            packed["w_heads"], packed["b_heads"])
    try:
        out = _build(True)(*args)
    except Exception:
        # Fallback for JAX builds without BlockSpec(pipeline_mode=...) support:
        # identical kernel, default double-buffered weights.
        out = _build(False)(*args)

    mean = out[:B, :A]
    log_std = out[:B, half_p:half_p + A]
    return mean, log_std


# ----------------------------- params ----------------------------------------

def xavier_uniform(key, fan_in, fan_out, dtype=jnp.float32):
    # matches torch.nn.init.xavier_uniform_ with gain=1
    bound = math.sqrt(6.0 / (fan_in + fan_out))
    return jax.random.uniform(key, (fan_in, fan_out), dtype, -bound, bound)


def init_raw_params(key, num_inputs, num_actions, hidden_dim):
    """Logical (unpadded) f32 params, [in, out] layout; biases [1, out]."""
    k1, k2, k3, k4 = jax.random.split(key, 4)
    return {
        "w1": xavier_uniform(k1, num_inputs, hidden_dim),
        "b1": jnp.zeros((1, hidden_dim), jnp.float32),
        "w2": xavier_uniform(k2, hidden_dim, hidden_dim),
        "b2": jnp.zeros((1, hidden_dim), jnp.float32),
        "wm": xavier_uniform(k3, hidden_dim, num_actions),
        "bm": jnp.zeros((1, num_actions), jnp.float32),
        "ws": xavier_uniform(k4, hidden_dim, num_actions),
        "bs": jnp.zeros((1, num_actions), jnp.float32),
    }


def pack_params(raw, num_inputs, num_actions, hidden_dim):
    """Zero-pad lane dims to multiples of 128, fuse heads, cast weights bf16.

    mean head occupies lanes [0, half_p), log_std head lanes [half_p, 2*half_p)
    so the kernel can clip with plain 128-aligned slices (no masks).
    Biases stay f32 (added to the f32 accumulator).
    """
    in_p = _round_up(num_inputs, 128)
    h_p = _round_up(hidden_dim, 128)
    half_p = _round_up(num_actions, 128)

    def pad2(a, rows, cols, dtype):
        a = a.astype(dtype)
        return jnp.pad(a, ((0, rows - a.shape[0]), (0, cols - a.shape[1])))

    w1 = pad2(raw["w1"], in_p, h_p, jnp.bfloat16)
    b1 = pad2(raw["b1"], 1, h_p, jnp.float32)
    w2 = pad2(raw["w2"], h_p, h_p, jnp.bfloat16)
    b2 = pad2(raw["b2"], 1, h_p, jnp.float32)

    wm = pad2(raw["wm"], h_p, half_p, jnp.bfloat16)
    ws = pad2(raw["ws"], h_p, half_p, jnp.bfloat16)
    w_heads = jnp.concatenate([wm, ws], axis=1)          # [h_p, 2*half_p]
    bm = pad2(raw["bm"], 1, half_p, jnp.float32)
    bs = pad2(raw["bs"], 1, half_p, jnp.float32)
    b_heads = jnp.concatenate([bm, bs], axis=1)          # [1, 2*half_p]

    return {
        "w1": w1, "b1": b1, "w2": w2, "b2": b2,
        "w_heads": w_heads, "b_heads": b_heads,
        "num_actions": num_actions, "half_p": half_p,
    }


# ----------------------------- reference --------------------------------------

def reference_forward(state, p):
    h1 = jnp.maximum(state @ p["w1"] + p["b1"], 0.0)
    h2 = jnp.maximum(h1 @ p["w2"] + p["b2"], 0.0)
    mean = h2 @ p["wm"] + p["bm"]
    log_std = jnp.clip(h2 @ p["ws"] + p["bs"], LOG_SIG_MIN, LOG_SIG_MAX)
    return mean, log_std


if __name__ == "__main__":
    key = jax.random.PRNGKey(0)
    k_param, k_state = jax.random.split(key)

    num_inputs, num_actions, hidden_dim = 16, 4, 32
    raw = init_raw_params(k_param, num_inputs, num_actions, hidden_dim)
    packed = pack_params(raw, num_inputs, num_actions, hidden_dim)

    # batch=8 -> single grid step; batch=20 -> 2-step "parallel" grid with
    # padded batch rows that must be sliced away.
    for batch in (8, 20):
        k_state, sub = jax.random.split(k_state)
        state = jax.random.normal(sub, (batch, num_inputs), jnp.float32)

        mean, log_std = gaussian_policy_forward(state, packed)
        jax.block_until_ready((mean, log_std))

        ref_mean, ref_log_std = reference_forward(state, raw)
        assert mean.shape == (batch, num_actions)
        assert log_std.shape == (batch, num_actions)
        # bf16 MXU operands with f32 accumulation -> loosened tolerance.
        assert jnp.allclose(mean, ref_mean, atol=1e-1, rtol=1e-1)
        assert jnp.allclose(log_std, ref_log_std, atol=1e-1, rtol=1e-1)
        assert float(jnp.max(log_std)) <= LOG_SIG_MAX + 1e-6
        assert float(jnp.min(log_std)) >= LOG_SIG_MIN - 1e-6

    # TODO(synk): sample() needs Normal.rsample/tanh/log_prob; the reparameterized
    # sampling belongs in host-side jax.random around this forward kernel.
    print("KERNEL_OK")
</pallas_src>

<mosaic_0001>
module attributes {stable_mosaic.version = 11 : i64} {
  func.func @gaussian_policy_kernel(%arg0: i32, %arg1: memref<8x128xbf16, #tpu.memory_space<vmem>>, %arg2: memref<128x128xbf16, #tpu.memory_space<vmem>>, %arg3: memref<1x128xf32, #tpu.memory_space<vmem>>, %arg4: memref<128x128xbf16, #tpu.memory_space<vmem>>, %arg5: memref<1x128xf32, #tpu.memory_space<vmem>>, %arg6: memref<128x256xbf16, #tpu.memory_space<vmem>>, %arg7: memref<1x256xf32, #tpu.memory_space<vmem>>, %arg8: memref<8x256xf32, #tpu.memory_space<vmem>>) attributes {dimension_semantics = [#tpu.dimension_semantics<parallel>], iteration_bounds = array<i64: 1>, scalar_prefetch = 0 : i64, scratch_operands = 0 : i64, tpu.core_type = #tpu.core_type<tc>, window_params = [{transform_indices = @transform_0, window_bounds = array<i64: 8, 128>}, {pipeline_mode = #tpu.pipeline_mode<synchronous>, transform_indices = @transform_1, window_bounds = array<i64: 128, 128>}, {pipeline_mode = #tpu.pipeline_mode<synchronous>, transform_indices = @transform_2, window_bounds = array<i64: 1, 128>}, {pipeline_mode = #tpu.pipeline_mode<synchronous>, transform_indices = @transform_3, window_bounds = array<i64: 128, 128>}, {pipeline_mode = #tpu.pipeline_mode<synchronous>, transform_indices = @transform_4, window_bounds = array<i64: 1, 128>}, {pipeline_mode = #tpu.pipeline_mode<synchronous>, transform_indices = @transform_5, window_bounds = array<i64: 128, 256>}, {pipeline_mode = #tpu.pipeline_mode<synchronous>, transform_indices = @transform_6, window_bounds = array<i64: 1, 256>}, {transform_indices = @transform_7, window_bounds = array<i64: 8, 256>}]} {
    %c0 = arith.constant 0 : index
    %c0_0 = arith.constant 0 : index
    %0 = vector.load %arg1[%c0, %c0_0] : memref<8x128xbf16, #tpu.memory_space<vmem>>, vector<8x128xbf16>
    %c0_1 = arith.constant 0 : index
    %c0_2 = arith.constant 0 : index
    %1 = vector.load %arg2[%c0_1, %c0_2] : memref<128x128xbf16, #tpu.memory_space<vmem>>, vector<128x128xbf16>
    %cst = arith.constant dense<0.000000e+00> : vector<8x128xf32>
    %2 = tpu.matmul %0, %1, %cst {dimension_numbers = #tpu.dot_dimension_numbers<[1], [0], [0], [1], [0, 0, 1, 1], [], []>} : vector<8x128xbf16>, vector<128x128xbf16>, vector<8x128xf32> -> vector<8x128xf32>
    %c0_3 = arith.constant 0 : index
    %c0_4 = arith.constant 0 : index
    %3 = vector.load %arg3[%c0_3, %c0_4] : memref<1x128xf32, #tpu.memory_space<vmem>>, vector<1x128xf32>
    %4 = vector.broadcast %3 : vector<1x128xf32> to vector<8x128xf32>
    %5 = arith.addf %2, %4 : vector<8x128xf32>
    %cst_5 = arith.constant 0.000000e+00 : f32
    %6 = vector.broadcast %cst_5 : f32 to vector<8x128xf32>
    %7 = arith.maximumf %5, %6 : vector<8x128xf32>
    %8 = arith.truncf %7 : vector<8x128xf32> to vector<8x128xbf16>
    %c0_6 = arith.constant 0 : index
    %c0_7 = arith.constant 0 : index
    %9 = vector.load %arg4[%c0_6, %c0_7] : memref<128x128xbf16, #tpu.memory_space<vmem>>, vector<128x128xbf16>
    %cst_8 = arith.constant dense<0.000000e+00> : vector<8x128xf32>
    %10 = tpu.matmul %8, %9, %cst_8 {dimension_numbers = #tpu.dot_dimension_numbers<[1], [0], [0], [1], [0, 0, 1, 1], [], []>} : vector<8x128xbf16>, vector<128x128xbf16>, vector<8x128xf32> -> vector<8x128xf32>
    %c0_9 = arith.constant 0 : index
    %c0_10 = arith.constant 0 : index
    %11 = vector.load %arg5[%c0_9, %c0_10] : memref<1x128xf32, #tpu.memory_space<vmem>>, vector<1x128xf32>
    %12 = vector.broadcast %11 : vector<1x128xf32> to vector<8x128xf32>
    %13 = arith.addf %10, %12 : vector<8x128xf32>
    %cst_11 = arith.constant 0.000000e+00 : f32
    %14 = vector.broadcast %cst_11 : f32 to vector<8x128xf32>
    %15 = arith.maximumf %13, %14 : vector<8x128xf32>
    %16 = arith.truncf %15 : vector<8x128xf32> to vector<8x128xbf16>
    %c0_12 = arith.constant 0 : index
    %c0_13 = arith.constant 0 : index
    %17 = vector.load %arg6[%c0_12, %c0_13] : memref<128x256xbf16, #tpu.memory_space<vmem>>, vector<128x256xbf16>
    %cst_14 = arith.constant dense<0.000000e+00> : vector<8x256xf32>
    %18 = tpu.matmul %16, %17, %cst_14 {dimension_numbers = #tpu.dot_dimension_numbers<[1], [0], [0], [1], [0, 0, 1, 1], [], []>} : vector<8x128xbf16>, vector<128x256xbf16>, vector<8x256xf32> -> vector<8x256xf32>
    %c0_15 = arith.constant 0 : index
    %c0_16 = arith.constant 0 : index
    %19 = vector.load %arg7[%c0_15, %c0_16] : memref<1x256xf32, #tpu.memory_space<vmem>>, vector<1x256xf32>
    %20 = vector.broadcast %19 : vector<1x256xf32> to vector<8x256xf32>
    %21 = arith.addf %18, %20 : vector<8x256xf32>
    %22 = vector.extract_strided_slice %21 {offsets = [0, 0], sizes = [8, 128], strides = [1, 1]} : vector<8x256xf32> to vector<8x128xf32>
    %c0_17 = arith.constant 0 : index
    %c0_18 = arith.constant 0 : index
    %23 = vector.load %arg8[%c0_17, %c0_18] : memref<8x256xf32, #tpu.memory_space<vmem>>, vector<8x128xf32>
    tpu.vector_store %arg8[%c0_17, %c0_18], %22 {strides = array<i32>} : memref<8x256xf32, #tpu.memory_space<vmem>>, vector<8x128xf32>,
    %24 = vector.extract_strided_slice %21 {offsets = [0, 128], sizes = [8, 128], strides = [1, 1]} : vector<8x256xf32> to vector<8x128xf32>
    %cst_19 = arith.constant -2.000000e+01 : f32
    %cst_20 = arith.constant 2.000000e+00 : f32
    %25 = vector.broadcast %cst_19 : f32 to vector<8x128xf32>
    %26 = arith.maximumf %25, %24 : vector<8x128xf32>
    %27 = vector.broadcast %cst_20 : f32 to vector<8x128xf32>
    %28 = arith.minimumf %27, %26 : vector<8x128xf32>
    %c0_21 = arith.constant 0 : index
    %c128 = arith.constant 128 : index
    %29 = vector.load %arg8[%c0_21, %c128] : memref<8x256xf32, #tpu.memory_space<vmem>>, vector<8x128xf32>
    tpu.vector_store %arg8[%c0_21, %c128], %28 {strides = array<i32>} : memref<8x256xf32, #tpu.memory_space<vmem>>, vector<8x128xf32>,
    return
  }
  func.func @transform_0(%arg0: i32) -> (i32, i32) {
    %c0_i32 = arith.constant 0 : i32
    %c0_i32_0 = arith.constant 0 : i32
    return %arg0, %c0_i32 : i32, i32
  }
  func.func @transform_1(%arg0: i32) -> (i32, i32) {
    %c0_i32 = arith.constant 0 : i32
    %c0_i32_0 = arith.constant 0 : i32
    %c0_i32_1 = arith.constant 0 : i32
    return %c0_i32, %c0_i32_0 : i32, i32
  }
  func.func @transform_2(%arg0: i32) -> (i32, i32) {
    %c0_i32 = arith.constant 0 : i32
    %c0_i32_0 = arith.constant 0 : i32
    %c0_i32_1 = arith.constant 0 : i32
    return %c0_i32, %c0_i32_0 : i32, i32
  }
  func.func @transform_3(%arg0: i32) -> (i32, i32) {
    %c0_i32 = arith.constant 0 : i32
    %c0_i32_0 = arith.constant 0 : i32
    %c0_i32_1 = arith.constant 0 : i32
    return %c0_i32, %c0_i32_0 : i32, i32
  }
  func.func @transform_4(%arg0: i32) -> (i32, i32) {
    %c0_i32 = arith.constant 0 : i32
    %c0_i32_0 = arith.constant 0 : i32
    %c0_i32_1 = arith.constant 0 : i32
    return %c0_i32, %c0_i32_0 : i32, i32
  }
  func.func @transform_5(%arg0: i32) -> (i32, i32) {
    %c0_i32 = arith.constant 0 : i32
    %c0_i32_0 = arith.constant 0 : i32
    %c0_i32_1 = arith.constant 0 : i32
    return %c0_i32, %c0_i32_0 : i32, i32
  }
  func.func @transform_6(%arg0: i32) -> (i32, i32) {
    %c0_i32 = arith.constant 0 : i32
    %c0_i32_0 = arith.constant 0 : i32
    %c0_i32_1 = arith.constant 0 : i32
    return %c0_i32, %c0_i32_0 : i32, i32
  }
  func.func @transform_7(%arg0: i32) -> (i32, i32) {
    %c0_i32 = arith.constant 0 : i32
    %c0_i32_0 = arith.constant 0 : i32
    return %arg0, %c0_i32 : i32, i32
  }
}

module attributes {stable_mosaic.version = 11 : i64} {
  func.func @gaussian_policy_kernel(%arg0: i32, %arg1: memref<8x128xbf16, #tpu.memory_space<vmem>>, %arg2: memref<128x128xbf16, #tpu.memory_space<vmem>>, %arg3: memref<1x128xf32, #tpu.memory_space<vmem>>, %arg4: memref<128x128xbf16, #tpu.memory_space<vmem>>, %arg5: memref<1x128xf32, #tpu.memory_space<vmem>>, %arg6: memref<128x256xbf16, #tpu.memory_space<vmem>>, %arg7: memref<1x256xf32, #tpu.memory_space<vmem>>, %arg8: memref<8x256xf32, #tpu.memory_space<vmem>>) attributes {dimension_semantics = [#tpu.dimension_semantics<parallel>], iteration_bounds = array<i64: 1>, scalar_prefetch = 0 : i64, scratch_operands = 0 : i64, tpu.core_type = #tpu.core_type<tc>, window_params = [{transform_indices = @transform_0, window_bounds = array<i64: 8, 128>}, {pipeline_mode = #tpu.pipeline_mode<synchronous>, transform_indices = @transform_1, window_bounds = array<i64: 128, 128>}, {pipeline_mode = #tpu.pipeline_mode<synchronous>, transform_indices = @transform_2, window_bounds = array<i64: 1, 128>}, {pipeline_mode = #tpu.pipeline_mode<synchronous>, transform_indices = @transform_3, window_bounds = array<i64: 128, 128>}, {pipeline_mode = #tpu.pipeline_mode<synchronous>, transform_indices = @transform_4, window_bounds = array<i64: 1, 128>}, {pipeline_mode = #tpu.pipeline_mode<synchronous>, transform_indices = @transform_5, window_bounds = array<i64: 128, 256>}, {pipeline_mode = #tpu.pipeline_mode<synchronous>, transform_indices = @transform_6, window_bounds = array<i64: 1, 256>}, {transform_indices = @transform_7, window_bounds = array<i64: 8, 256>}]} {
    %c0 = arith.constant 0 : index
    %c0_0 = arith.constant 0 : index
    %0 = vector.load %arg1[%c0, %c0_0] : memref<8x128xbf16, #tpu.memory_space<vmem>>, vector<8x128xbf16>
    %c0_1 = arith.constant 0 : index
    %c0_2 = arith.constant 0 : index
    %1 = vector.load %arg2[%c0_1, %c0_2] : memref<128x128xbf16, #tpu.memory_space<vmem>>, vector<128x128xbf16>
    %cst = arith.constant dense<0.000000e+00> : vector<8x128xf32>
    %2 = tpu.matmul %0, %1, %cst {dimension_numbers = #tpu.dot_dimension_numbers<[1], [0], [0], [1], [0, 0, 1, 1], [], []>} : vector<8x128xbf16>, vector<128x128xbf16>, vector<8x128xf32> -> vector<8x128xf32>
    %c0_3 = arith.constant 0 : index
    %c0_4 = arith.constant 0 : index
    %3 = vector.load %arg3[%c0_3, %c0_4] : memref<1x128xf32, #tpu.memory_space<vmem>>, vector<1x128xf32>
    %4 = vector.broadcast %3 : vector<1x128xf32> to vector<8x128xf32>
    %5 = arith.addf %2, %4 : vector<8x128xf32>
    %cst_5 = arith.constant 0.000000e+00 : f32
    %6 = vector.broadcast %cst_5 : f32 to vector<8x128xf32>
    %7 = arith.maximumf %5, %6 : vector<8x128xf32>
    %8 = arith.truncf %7 : vector<8x128xf32> to vector<8x128xbf16>
    %c0_6 = arith.constant 0 : index
    %c0_7 = arith.constant 0 : index
    %9 = vector.load %arg4[%c0_6, %c0_7] : memref<128x128xbf16, #tpu.memory_space<vmem>>, vector<128x128xbf16>
    %cst_8 = arith.constant dense<0.000000e+00> : vector<8x128xf32>
    %10 = tpu.matmul %8, %9, %cst_8 {dimension_numbers = #tpu.dot_dimension_numbers<[1], [0], [0], [1], [0, 0, 1, 1], [], []>} : vector<8x128xbf16>, vector<128x128xbf16>, vector<8x128xf32> -> vector<8x128xf32>
    %c0_9 = arith.constant 0 : index
    %c0_10 = arith.constant 0 : index
    %11 = vector.load %arg5[%c0_9, %c0_10] : memref<1x128xf32, #tpu.memory_space<vmem>>, vector<1x128xf32>
    %12 = vector.broadcast %11 : vector<1x128xf32> to vector<8x128xf32>
    %13 = arith.addf %10, %12 : vector<8x128xf32>
    %cst_11 = arith.constant 0.000000e+00 : f32
    %14 = vector.broadcast %cst_11 : f32 to vector<8x128xf32>
    %15 = arith.maximumf %13, %14 : vector<8x128xf32>
    %16 = arith.truncf %15 : vector<8x128xf32> to vector<8x128xbf16>
    %c0_12 = arith.constant 0 : index
    %c0_13 = arith.constant 0 : index
    %17 = vector.load %arg6[%c0_12, %c0_13] : memref<128x256xbf16, #tpu.memory_space<vmem>>, vector<128x256xbf16>
    %cst_14 = arith.constant dense<0.000000e+00> : vector<8x256xf32>
    %18 = tpu.matmul %16, %17, %cst_14 {dimension_numbers = #tpu.dot_dimension_numbers<[1], [0], [0], [1], [0, 0, 1, 1], [], []>} : vector<8x128xbf16>, vector<128x256xbf16>, vector<8x256xf32> -> vector<8x256xf32>
    %c0_15 = arith.constant 0 : index
    %c0_16 = arith.constant 0 : index
    %19 = vector.load %arg7[%c0_15, %c0_16] : memref<1x256xf32, #tpu.memory_space<vmem>>, vector<1x256xf32>
    %20 = vector.broadcast %19 : vector<1x256xf32> to vector<8x256xf32>
    %21 = arith.addf %18, %20 : vector<8x256xf32>
    %22 = vector.extract_strided_slice %21 {offsets = [0, 0], sizes = [8, 128], strides = [1, 1]} : vector<8x256xf32> to vector<8x128xf32>
    %c0_17 = arith.constant 0 : index
    %c0_18 = arith.constant 0 : index
    %23 = vector.load %arg8[%c0_17, %c0_18] : memref<8x256xf32, #tpu.memory_space<vmem>>, vector<8x128xf32>
    tpu.vector_store %arg8[%c0_17, %c0_18], %22 {strides = array<i32>} : memref<8x256xf32, #tpu.memory_space<vmem>>, vector<8x128xf32>,
    %24 = vector.extract_strided_slice %21 {offsets = [0, 128], sizes = [8, 128], strides = [1, 1]} : vector<8x256xf32> to vector<8x128xf32>
    %cst_19 = arith.constant -2.000000e+01 : f32
    %cst_20 = arith.constant 2.000000e+00 : f32
    %25 = vector.broadcast %cst_19 : f32 to vector<8x128xf32>
    %26 = arith.maximumf %25, %24 : vector<8x128xf32>
    %27 = vector.broadcast %cst_20 : f32 to vector<8x128xf32>
    %28 = arith.minimumf %27, %26 : vector<8x128xf32>
    %c0_21 = arith.constant 0 : index
    %c128 = arith.constant 128 : index
    %29 = vector.load %arg8[%c0_21, %c128] : memref<8x256xf32, #tpu.memory_space<vmem>>, vector<8x128xf32>
    tpu.vector_store %arg8[%c0_21, %c128], %28 {strides = array<i32>} : memref<8x256xf32, #tpu.memory_space<vmem>>, vector<8x128xf32>,
    return
  }
  func.func @transform_0(%arg0: i32) -> (i32, i32) {
    %c0_i32 = arith.constant 0 : i32
    %c0_i32_0 = arith.constant 0 : i32
    return %arg0, %c0_i32 : i32, i32
  }
  func.func @transform_1(%arg0: i32) -> (i32, i32) {
    %c0_i32 = arith.constant 0 : i32
    %c0_i32_0 = arith.constant 0 : i32
    %c0_i32_1 = arith.constant 0 : i32
    return %c0_i32, %c0_i32_0 : i32, i32
  }
  func.func @transform_2(%arg0: i32) -> (i32, i32) {
    %c0_i32 = arith.constant 0 : i32
    %c0_i32_0 = arith.constant 0 : i32
    %c0_i32_1 = arith.constant 0 : i32
    return %c0_i32, %c0_i32_0 : i32, i32
  }
  func.func @transform_3(%arg0: i32) -> (i32, i32) {
    %c0_i32 = arith.constant 0 : i32
    %c0_i32_0 = arith.constant 0 : i32
    %c0_i32_1 = arith.constant 0 : i32
    return %c0_i32, %c0_i32_0 : i32, i32
  }
  func.func @transform_4(%arg0: i32) -> (i32, i32) {
    %c0_i32 = arith.constant 0 : i32
    %c0_i32_0 = arith.constant 0 : i32
    %c0_i32_1 = arith.constant 0 : i32
    return %c0_i32, %c0_i32_0 : i32, i32
  }
  func.func @transform_5(%arg0: i32) -> (i32, i32) {
    %c0_i32 = arith.constant 0 : i32
    %c0_i32_0 = arith.constant 0 : i32
    %c0_i32_1 = arith.constant 0 : i32
    return %c0_i32, %c0_i32_0 : i32, i32
  }
  func.func @transform_6(%arg0: i32) -> (i32, i32) {
    %c0_i32 = arith.constant 0 : i32
    %c0_i32_0 = arith.constant 0 : i32
    %c0_i32_1 = arith.constant 0 : i32
    return %c0_i32, %c0_i32_0 : i32, i32
  }
  func.func @transform_7(%arg0: i32) -> (i32, i32) {
    %c0_i32 = arith.constant 0 : i32
    %c0_i32_0 = arith.constant 0 : i32
    return %arg0, %c0_i32 : i32, i32
  }
}

</mosaic_0001>

<bundles_post_ra>
// kernel: tpu_custom_call.1
= control target key start
LH: loop header
LB: loop body
LE: loop exit
PB: predicated region body
PF: predicated region fallthrough
CT: control target
= control target key end

     0   :  { %12 = vsyncpa [#allocation3], 0  ;;  %s817_s0 = inlined_call_operand.hbm [shape: bf16[8,128], index: 0, kind: input, shape index: {}]   ;;  %s818_s1 = inlined_call_operand.hbm [shape: bf16[128,128], index: 1, kind: input, shape index: {}]   ;;  %s819_s2 = inlined_call_operand.vmem [shape: f32[1,128], index: 2, kind: input, shape index: {}]   ;;  %s820_s3 = inlined_call_operand.hbm [shape: bf16[128,128], index: 3, kind: input, shape index: {}]   ;;  %s821_s4 = inlined_call_operand.hbm [shape: f32[1,128], index: 4, kind: input, shape index: {}]   ;;  %s822_s5 = inlined_call_operand.hbm [shape: bf16[128,256], index: 5, kind: input, shape index: {}]   ;;  %s823_s6 = inlined_call_operand.vmem [shape: f32[1,256], index: 6, kind: input, shape index: {}]   ;;  %s824_s7 = inlined_call_operand.hbm [shape: f32[8,256], index: 7, kind: output, shape index: {}]  }
   0x1   :  { %13 = vsyncpa [#allocation6], 0 }
   0x2   :  { %14 = vsyncpa [#allocation9], 0  ;;  %s31_s26 = sshll.u32 %s818_s1, 4  ;;  %s32_s26 = int_to_ptr.hbm [resolvable:$true] %s31_s26 }
   0x3   :  { %15 = vsyncpa [#allocation4], 0  ;;  %s743_s27 = smov [#allocation5]   ;;  %s60_s8 = sshll.u32 %s821_s4, 4  ;;  %s61_s8 = int_to_ptr.hbm [resolvable:$true] %s60_s8 }
   0x4   :  { %s33_s28 = sshll.u32 %s743_s27, 4  ;;  %s744_s9 = smov 64   ;;  %s34_s28 = int_to_ptr.vmem [resolvable:$true] %s33_s28 }
   0x5   :  { %s745_s10 = smov 4   ;;  %s746_s11 = smov [#allocation8]  }
   0x6   :  { %39 = dma.hbm_to_vmem [thread:$0]  %s32_s26, 1024, %s34_s28, [#allocation6], %s744_s9, %s744_s9, %s745_s10  }
   0x7   :  { %s62_s12 = sshll.u32 %s746_s11, 4  ;;  %s21_s15 = sshll.u32 %s817_s0, 4  ;;  %s63_s12 = int_to_ptr.vmem [resolvable:$true] %s62_s12  ;;  %s22_s15 = int_to_ptr.hbm [resolvable:$true] %s21_s15 }
   0x8   :  { %65 = dma.hbm_to_vmem [thread:$0]  %s61_s8, 16, %s63_s12, [#allocation9]  }
   0x9   :  { %s46_s17 = sshll.u32 %s820_s3, 4  ;;  %s747_s18 = smov [#allocation2]   ;;  %s47_s17 = int_to_ptr.hbm [resolvable:$true] %s46_s17 }
   0xa   :  { %s23_s19 = sshll.u32 %s747_s18, 4  ;;  %s748_s4 = smov [#allocation7]   ;;  %s24_s19 = int_to_ptr.vmem [resolvable:$true] %s23_s19 }
   0xb   :  { %26 = dma.hbm_to_vmem [thread:$0]  %s22_s15, 64, %s24_s19, [#allocation3]  }
   0xc   :  { %s48_s20 = sshll.u32 %s748_s4, 4  ;;  %s70_s23 = sshll.u32 %s822_s5, 4  ;;  %s49_s20 = int_to_ptr.vmem [resolvable:$true] %s48_s20  ;;  %s71_s23 = int_to_ptr.hbm [resolvable:$true] %s70_s23 }
   0xd   :  { %54 = dma.hbm_to_vmem [thread:$0]  %s47_s17, 1024, %s49_s20, [#allocation6], %s744_s9, %s744_s9, %s745_s10  }
   0xe   :  { %s749_s0 = smov [#allocation10]   ;;  %s750_s25 = smov 128  }
   0xf   :  { %s72_s24 = sshll.u32 %s749_s0, 4  ;;  %s751_s26 = smov 8   ;;  %s73_s24 = int_to_ptr.vmem [resolvable:$true] %s72_s24 }
  0x10   :  { %78 = dma.hbm_to_vmem [thread:$0]  %s71_s23, 2048, %s73_s24, [#allocation9], %s750_s25, %s750_s25, %s751_s26  }
  0x11   :  { %735 = dma.done.wait [#allocation3], 64  }
  0x12   :  { %736 = vsyncadd [#allocation3], 4294967232 }
  0x13   :  { %737 = dma.done.wait [#allocation6], 2048  }
  0x14   :  { %738 = vsyncadd [#allocation6], 4294965248 }
  0x15   :  { %739 = dma.done.wait [#allocation9], 2064  }
  0x16   :  { %740 = vsyncadd [#allocation9], 4294965232  ;;  %v554_v0 = vld [vmem:[#allocation5 + $0x38] sm:$0xff]  ;;  %v553_v1 = vld [vmem:[#allocation5 + $0x30] sm:$0xff]  ;;  %s752_s28 = smov [#allocation11]   ;;  %s407_s9 = sshll.u32 %s824_s7, 4  ;;  %s408_s9 = int_to_ptr.hbm [resolvable:$true] %s407_s9 }
  0x17   :  { %170 = vmatpush.bf16.msra.mxu0 %v554_v0  ;;  %v562_v2 = vld [vmem:[#allocation7 + $0x38] sm:$0xff]  ;;  %v561_v3 = vld [vmem:[#allocation7 + $0x30] sm:$0xff]  ;;  %v552_v4 = vld [vmem:[#allocation5 + $0x28] sm:$0xff]  ;;  %s405_s29 = sshll.u32 %s752_s28, 4  ;;  %s406_s29 = int_to_ptr.vmem [resolvable:$true] %s405_s29 }
  0x18   :  { %253 = vmatpush.bf16.msra.mxu1 %v562_v2  ;;  %v560_v5 = vld [vmem:[#allocation7 + $0x28] sm:$0xff]  ;;  %v551_v6 = vld [vmem:[#allocation5 + $0x20] sm:$0xff]  ;;  %v550_v8 = vld [vmem:[#allocation5 + $0x18] sm:$0xff] }
  0x19   :  { %v559_v7 = vld [vmem:[#allocation7 + $0x20] sm:$0xff]  ;;  %v558_v9 = vld [vmem:[#allocation7 + $0x18] sm:$0xff]  ;;  %v549_v10 = vld [vmem:[#allocation5 + $0x10] sm:$0xff] }
  0x1a   :  { %v557_v11 = vld [vmem:[#allocation7 + $0x10] sm:$0xff]  ;;  %v548_v12 = vld [vmem:[#allocation5 + $0x8] sm:$0xff]  ;;  %v547_v13 = vld [vmem:[#allocation5] sm:$0xff] }
  0x1b   :  { %171 = vmatpush.bf16.msra.mxu0 %v553_v1  ;;  %v101_v14 = vld [vmem:[#allocation2] sm:$0xf]  ;;  %v556_v15 = vld [vmem:[#allocation7 + $0x8] sm:$0xff]  ;;  %v555_v16 = vld [vmem:[#allocation7] sm:$0xff] }
  0x1c   :  { %254 = vmatpush.bf16.msra.mxu1 %v561_v3  ;;  %v541_v17 = vld [vmem:[#allocation10 + $0x70] sm:$0xf]  ;;  %v578_v18 = vld [vmem:[#allocation10 + $0x74] sm:$0xf0]  ;;  %v577_v19 = vld [vmem:[#allocation10 + $0x74] sm:$0xf] }
  0x1d   :  { %v542_v20 = vor.u32 %v578_v18, %v541_v17  ;;  %v543_v21 = vld [vmem:[#allocation10 + $0x78] sm:$0xf0]  ;;  %v533_v22 = vld [vmem:[#allocation10 + $0x60] sm:$0xf]  ;;  %v576_v23 = vld [vmem:[#allocation10 + $0x64] sm:$0xf0] }
  0x1e   :  { %v546_v24 = vor.u32 %v577_v19, %v543_v21  ;;  %v575_v25 = vld [vmem:[#allocation10 + $0x64] sm:$0xf]  ;;  %v535_v26 = vld [vmem:[#allocation10 + $0x68] sm:$0xf0]  ;;  %v534_v27 = vor.u32 %v576_v23, %v533_v22  ;;  %v525_v29 = vld [vmem:[#allocation10 + $0x50] sm:$0xf] }
  0x1f   :  { %172 = vmatpush.bf16.msra.mxu0 %v552_v4  ;;  %370 = vmatpush.bf16.msra.mxu2 %v542_v20  ;;  %v538_v28 = vor.u32 %v575_v25, %v535_v26  ;;  %v574_v30 = vld [vmem:[#allocation10 + $0x54] sm:$0xf0]  ;;  %v573_v31 = vld [vmem:[#allocation10 + $0x54] sm:$0xf]  ;;  %v527_v32 = vld [vmem:[#allocation10 + $0x58] sm:$0xf0] }
  0x20   :  { %255 = vmatpush.bf16.msra.mxu1 %v560_v5  ;;  %383 = vmatpush.bf16.msra.mxu3 %v546_v24  ;;  %v526_v33 = vor.u32 %v574_v30, %v525_v29  ;;  %v530_v34 = vor.u32 %v573_v31, %v527_v32  ;;  %v517_v35 = vld [vmem:[#allocation10 + $0x40] sm:$0xf]  ;;  %v572_v36 = vld [vmem:[#allocation10 + $0x44] sm:$0xf0]  ;;  %v571_v37 = vld [vmem:[#allocation10 + $0x44] sm:$0xf] }
  0x21   :  { %v519_v38 = vld [vmem:[#allocation10 + $0x48] sm:$0xf0]  ;;  %v518_v39 = vor.u32 %v572_v36, %v517_v35  ;;  %v509_v41 = vld [vmem:[#allocation10 + $0x30] sm:$0xf]  ;;  %v570_v42 = vld [vmem:[#allocation10 + $0x34] sm:$0xf0] }
  0x22   :  { %v522_v40 = vor.u32 %v571_v37, %v519_v38  ;;  %v569_v43 = vld [vmem:[#allocation10 + $0x34] sm:$0xf]  ;;  %v511_v44 = vld [vmem:[#allocation10 + $0x38] sm:$0xf0]  ;;  %v510_v45 = vor.u32 %v570_v42, %v509_v41  ;;  %v501_v47 = vld [vmem:[#allocation10 + $0x20] sm:$0xf] }
  0x23   :  { %173 = vmatpush.bf16.msra.mxu0 %v551_v6  ;;  %371 = vmatpush.bf16.msra.mxu2 %v534_v27  ;;  %v514_v46 = vor.u32 %v569_v43, %v511_v44  ;;  %v568_v48 = vld [vmem:[#allocation10 + $0x24] sm:$0xf0]  ;;  %v567_v49 = vld [vmem:[#allocation10 + $0x24] sm:$0xf]  ;;  %v503_v50 = vld [vmem:[#allocation10 + $0x28] sm:$0xf0] }
  0x24   :  { %256 = vmatpush.bf16.msra.mxu1 %v559_v7  ;;  %384 = vmatpush.bf16.msra.mxu3 %v538_v28  ;;  %v502_v51 = vor.u32 %v568_v48, %v501_v47  ;;  %v506_v52 = vor.u32 %v567_v49, %v503_v50  ;;  %v589_v53 = vld [vmem:[%s819_s2] ss:$0 sm:$0xff]  ;;  %v493_v59 = vld [vmem:[#allocation10 + $0x10] sm:$0xf]  ;;  %v565_v61 = vld [vmem:[#allocation10 + $0x14] sm:$0xf] }
  0x25   :  { %v566_v60 = vld [vmem:[#allocation10 + $0x14] sm:$0xf0]  ;;  %v495_v63 = vld [vmem:[#allocation10 + $0x18] sm:$0xf0]  ;;  %v485_v1 = vld [vmem:[#allocation10] sm:$0xf] }
  0x26   :  { %v494_v62 = vor.u32 %v566_v60, %v493_v59  ;;  %v498_v0 = vor.u32 %v565_v61, %v495_v63  ;;  %v564_v2 = vld [vmem:[#allocation10 + $0x4] sm:$0xf0]  ;;  %v563_v3 = vld [vmem:[#allocation10 + $0x4] sm:$0xf]  ;;  %v487_v5 = vld [vmem:[#allocation10 + $0x8] sm:$0xf0] }
  0x27   :  { %174 = vmatpush.bf16.msra.mxu0 %v550_v8  ;;  %372 = vmatpush.bf16.msra.mxu2 %v526_v33  ;;  %v486_v4 = vor.u32 %v564_v2, %v485_v1  ;;  %v490_v6 = vor.u32 %v563_v3, %v487_v5  ;;  %v590_v7 = vld [vmem:[#allocation8] ss:$0 sm:$0xff] }
  0x28   :  { %257 = vmatpush.bf16.msra.mxu1 %v558_v9  ;;  %385 = vmatpush.bf16.msra.mxu3 %v530_v34 }
  0x2b   :  { %175 = vmatpush.bf16.msra.mxu0 %v549_v10  ;;  %373 = vmatpush.bf16.msra.mxu2 %v518_v39 }
  0x2c   :  { %258 = vmatpush.bf16.msra.mxu1 %v557_v11  ;;  %386 = vmatpush.bf16.msra.mxu3 %v522_v40 }
  0x2f   :  { %176 = vmatpush.bf16.msra.mxu0 %v548_v12  ;;  %374 = vmatpush.bf16.msra.mxu2 %v510_v45 }
  0x30   :  { %259 = vmatpush.bf16.msra.mxu1 %v556_v15  ;;  %387 = vmatpush.bf16.msra.mxu3 %v514_v46 }
  0x33   :  { %177 = vmatpush.bf16.msra.mxu0 %v547_v13  ;;  %375 = vmatpush.bf16.msra.mxu2 %v502_v51  ;;  %v284_v13 = vld [vmem:[%s823_s6] sm:$0x3] }
  0x34   :  { %260 = vmatpush.bf16.msra.mxu1 %v555_v16  ;;  %388 = vmatpush.bf16.msra.mxu3 %v506_v52  ;;  %v287_v15 = vperm.slane %v284_v13, 1 }
  0x36   :  { %178 = vmatmul.bf16.vlgmr.msra.gmra.mxu0 %v101_v14  ;;  %v286_v14 = vperm.slane %v284_v13, 0 }
  0x37   :  { %376 = vmatpush.bf16.msra.mxu2 %v494_v62 }
  0x38   :  { %389 = vmatpush.bf16.msra.mxu3 %v498_v0 }
  0x3b   :  { %377 = vmatpush.bf16.msra.mxu2 %v486_v4 }
  0x3c   :  { %390 = vmatpush.bf16.msra.mxu3 %v490_v6 }
  0xb3   :  { %v179_v54 = vpop.f32.mrf.mxu0 }
  0xb4   :  { %v180_v55 = vadd.f32 %v589_v53, %v179_v54 }
  0xb6   :  { %v183_v56 = vmax.f32 %v180_v55, 0.0 }
  0xb8   :  { %v184_v57 = vpack.c.bf16 %v183_v56, %v183_v56 }
  0xba   :  { %261 = vmatmul.bf16.vlgmr.msra.gmra.mxu1 %v184_v57 }
  0xbb   :  { %v181_v58 = vpop.f32.mrf.mxu0 }
 0x137   :  { %v262_v8 = vpop.f32.mrf.mxu1 }
 0x138   :  { %v263_v9 = vadd.f32 %v590_v7, %v262_v8 }
 0x13a   :  { %v266_v10 = vmax.f32 %v263_v9, 0.0 }
 0x13c   :  { %v267_v11 = vpack.c.bf16 %v266_v10, %v266_v10 }
 0x13e   :  { %378 = vmatmul.bf16.vlgmr.msra.gmra.mxu2 %v267_v11  ;;  %391 = vmatmul.bf16.vlgmr.msra.gmra.mxu3 %v267_v11 }
 0x13f   :  { %v264_v12 = vpop.f32.mrf.mxu1 }
 0x1c1   :  { %v379_v16 = vpop.f32.mrf.mxu2  ;;  %v392_v17 = vpop.f32.mrf.mxu3 }
 0x1c2   :  { %v380_v18 = vadd.f32 %v379_v16, %v286_v14  ;;  %v393_v19 = vadd.f32 %v392_v17, %v287_v15 }
 0x1c4   :  { %396 = vst [vmem:[#allocation11] sm:$0xff] %v380_v18  ;;  %v397_v20 = vmax.f32 %v393_v19, -20.0 }
 0x1c6   :  { %v398_v21 = vmin.f32 %v397_v20, 2.0 }
 0x1c8   :  { %399 = vst [vmem:[#allocation11 + $0x8] sm:$0xff] %v398_v21 }
 0x1c9   :  { %v381_v22 = vpop.f32.mrf.mxu2  ;;  %v394_v23 = vpop.f32.mrf.mxu3  ;;  %410 = dma.vmem_to_hbm [thread:$0]  %s406_s29, 256, %s408_s9, [#allocation4]  }
 0x1ca   :  { %741 = dma.done.wait [#allocation4], 256  }
 0x1cb   :  { %742 = vsyncadd [#allocation4], 4294967040 }
 0x1cc   :  { %415 = vsyncpa [#allocation3], 1 }
 0x1cd   :  { %416 = vsyncpa [#allocation6], 1 }
 0x1ce   :  { %417 = vsyncpa [#allocation9], 1 }
 0x1cf   :  { %418 = vsyncpa [#allocation4], 1 }

// kernel: tpu_custom_call.1
= control target key start
LH: loop header
LB: loop body
LE: loop exit
PB: predicated region body
PF: predicated region fallthrough
CT: control target
= control target key end

     0   :  { %12 = vsyncpa [#allocation3], 0  ;;  %s817_s0 = inlined_call_operand.hbm [shape: bf16[8,128], index: 0, kind: input, shape index: {}]   ;;  %s818_s1 = inlined_call_operand.hbm [shape: bf16[128,128], index: 1, kind: input, shape index: {}]   ;;  %s819_s2 = inlined_call_operand.vmem [shape: f32[1,128], index: 2, kind: input, shape index: {}]   ;;  %s820_s3 = inlined_call_operand.hbm [shape: bf16[128,128], index: 3, kind: input, shape index: {}]   ;;  %s821_s4 = inlined_call_operand.hbm [shape: f32[1,128], index: 4, kind: input, shape index: {}]   ;;  %s822_s5 = inlined_call_operand.hbm [shape: bf16[128,256], index: 5, kind: input, shape index: {}]   ;;  %s823_s6 = inlined_call_operand.vmem [shape: f32[1,256], index: 6, kind: input, shape index: {}]   ;;  %s824_s7 = inlined_call_operand.hbm [shape: f32[8,256], index: 7, kind: output, shape index: {}]  }
   0x1   :  { %13 = vsyncpa [#allocation6], 0 }
   0x2   :  { %14 = vsyncpa [#allocation9], 0  ;;  %s31_s26 = sshll.u32 %s818_s1, 4  ;;  %s32_s26 = int_to_ptr.hbm [resolvable:$true] %s31_s26 }
   0x3   :  { %15 = vsyncpa [#allocation4], 0  ;;  %s743_s27 = smov [#allocation5]   ;;  %s60_s8 = sshll.u32 %s821_s4, 4  ;;  %s61_s8 = int_to_ptr.hbm [resolvable:$true] %s60_s8 }
   0x4   :  { %s33_s28 = sshll.u32 %s743_s27, 4  ;;  %s744_s9 = smov 64   ;;  %s34_s28 = int_to_ptr.vmem [resolvable:$true] %s33_s28 }
   0x5   :  { %s745_s10 = smov 4   ;;  %s746_s11 = smov [#allocation8]  }
   0x6   :  { %39 = dma.hbm_to_vmem [thread:$0]  %s32_s26, 1024, %s34_s28, [#allocation6], %s744_s9, %s744_s9, %s745_s10  }
   0x7   :  { %s62_s12 = sshll.u32 %s746_s11, 4  ;;  %s21_s15 = sshll.u32 %s817_s0, 4  ;;  %s63_s12 = int_to_ptr.vmem [resolvable:$true] %s62_s12  ;;  %s22_s15 = int_to_ptr.hbm [resolvable:$true] %s21_s15 }
   0x8   :  { %65 = dma.hbm_to_vmem [thread:$0]  %s61_s8, 16, %s63_s12, [#allocation9]  }
   0x9   :  { %s46_s17 = sshll.u32 %s820_s3, 4  ;;  %s747_s18 = smov [#allocation2]   ;;  %s47_s17 = int_to_ptr.hbm [resolvable:$true] %s46_s17 }
   0xa   :  { %s23_s19 = sshll.u32 %s747_s18, 4  ;;  %s748_s4 = smov [#allocation7]   ;;  %s24_s19 = int_to_ptr.vmem [resolvable:$true] %s23_s19 }
   0xb   :  { %26 = dma.hbm_to_vmem [thread:$0]  %s22_s15, 64, %s24_s19, [#allocation3]  }
   0xc   :  { %s48_s20 = sshll.u32 %s748_s4, 4  ;;  %s70_s23 = sshll.u32 %s822_s5, 4  ;;  %s49_s20 = int_to_ptr.vmem [resolvable:$true] %s48_s20  ;;  %s71_s23 = int_to_ptr.hbm [resolvable:$true] %s70_s23 }
   0xd   :  { %54 = dma.hbm_to_vmem [thread:$0]  %s47_s17, 1024, %s49_s20, [#allocation6], %s744_s9, %s744_s9, %s745_s10  }
   0xe   :  { %s749_s0 = smov [#allocation10]   ;;  %s750_s25 = smov 128  }
   0xf   :  { %s72_s24 = sshll.u32 %s749_s0, 4  ;;  %s751_s26 = smov 8   ;;  %s73_s24 = int_to_ptr.vmem [resolvable:$true] %s72_s24 }
  0x10   :  { %78 = dma.hbm_to_vmem [thread:$0]  %s71_s23, 2048, %s73_s24, [#allocation9], %s750_s25, %s750_s25, %s751_s26  }
  0x11   :  { %735 = dma.done.wait [#allocation3], 64  }
  0x12   :  { %736 = vsyncadd [#allocation3], 4294967232 }
  0x13   :  { %737 = dma.done.wait [#allocation6], 2048  }
  0x14   :  { %738 = vsyncadd [#allocation6], 4294965248 }
  0x15   :  { %739 = dma.done.wait [#allocation9], 2064  }
  0x16   :  { %740 = vsyncadd [#allocation9], 4294965232  ;;  %v554_v0 = vld [vmem:[#allocation5 + $0x38] sm:$0xff]  ;;  %v553_v1 = vld [vmem:[#allocation5 + $0x30] sm:$0xff]  ;;  %s752_s28 = smov [#allocation11]   ;;  %s407_s9 = sshll.u32 %s824_s7, 4  ;;  %s408_s9 = int_to_ptr.hbm [resolvable:$true] %s407_s9 }
  0x17   :  { %170 = vmatpush.bf16.msra.mxu0 %v554_v0  ;;  %v562_v2 = vld [vmem:[#allocation7 + $0x38] sm:$0xff]  ;;  %v561_v3 = vld [vmem:[#allocation7 + $0x30] sm:$0xff]  ;;  %v552_v4 = vld [vmem:[#allocation5 + $0x28] sm:$0xff]  ;;  %s405_s29 = sshll.u32 %s752_s28, 4  ;;  %s406_s29 = int_to_ptr.vmem [resolvable:$true] %s405_s29 }
  0x18   :  { %253 = vmatpush.bf16.msra.mxu1 %v562_v2  ;;  %v560_v5 = vld [vmem:[#allocation7 + $0x28] sm:$0xff]  ;;  %v551_v6 = vld [vmem:[#allocation5 + $0x20] sm:$0xff]  ;;  %v550_v8 = vld [vmem:[#allocation5 + $0x18] sm:$0xff] }
  0x19   :  { %v559_v7 = vld [vmem:[#allocation7 + $0x20] sm:$0xff]  ;;  %v558_v9 = vld [vmem:[#allocation7 + $0x18] sm:$0xff]  ;;  %v549_v10 = vld [vmem:[#allocation5 + $0x10] sm:$0xff] }
  0x1a   :  { %v557_v11 = vld [vmem:[#allocation7 + $0x10] sm:$0xff]  ;;  %v548_v12 = vld [vmem:[#allocation5 + $0x8] sm:$0xff]  ;;  %v547_v13 = vld [vmem:[#allocation5] sm:$0xff] }
  0x1b   :  { %171 = vmatpush.bf16.msra.mxu0 %v553_v1  ;;  %v101_v14 = vld [vmem:[#allocation2] sm:$0xf]  ;;  %v556_v15 = vld [vmem:[#allocation7 + $0x8] sm:$0xff]  ;;  %v555_v16 = vld [vmem:[#allocation7] sm:$0xff] }
  0x1c   :  { %254 = vmatpush.bf16.msra.mxu1 %v561_v3  ;;  %v541_v17 = vld [vmem:[#allocation10 + $0x70] sm:$0xf]  ;;  %v578_v18 = vld [vmem:[#allocation10 + $0x74] sm:$0xf0]  ;;  %v577_v19 = vld [vmem:[#allocation10 + $0x74] sm:$0xf] }
  0x1d   :  { %v542_v20 = vor.u32 %v578_v18, %v541_v17  ;;  %v543_v21 = vld [vmem:[#allocation10 + $0x78] sm:$0xf0]  ;;  %v533_v22 = vld [vmem:[#allocation10 + $0x60] sm:$0xf]  ;;  %v576_v23 = vld [vmem:[#allocation10 + $0x64] sm:$0xf0] }
  0x1e   :  { %v546_v24 = vor.u32 %v577_v19, %v543_v21  ;;  %v575_v25 = vld [vmem:[#allocation10 + $0x64] sm:$0xf]  ;;  %v535_v26 = vld [vmem:[#allocation10 + $0x68] sm:$0xf0]  ;;  %v534_v27 = vor.u32 %v576_v23, %v533_v22  ;;  %v525_v29 = vld [vmem:[#allocation10 + $0x50] sm:$0xf] }
  0x1f   :  { %172 = vmatpush.bf16.msra.mxu0 %v552_v4  ;;  %370 = vmatpush.bf16.msra.mxu2 %v542_v20  ;;  %v538_v28 = vor.u32 %v575_v25, %v535_v26  ;;  %v574_v30 = vld [vmem:[#allocation10 + $0x54] sm:$0xf0]  ;;  %v573_v31 = vld [vmem:[#allocation10 + $0x54] sm:$0xf]  ;;  %v527_v32 = vld [vmem:[#allocation10 + $0x58] sm:$0xf0] }
  0x20   :  { %255 = vmatpush.bf16.msra.mxu1 %v560_v5  ;;  %383 = vmatpush.bf16.msra.mxu3 %v546_v24  ;;  %v526_v33 = vor.u32 %v574_v30, %v525_v29  ;;  %v530_v34 = vor.u32 %v573_v31, %v527_v32  ;;  %v517_v35 = vld [vmem:[#allocation10 + $0x40] sm:$0xf]  ;;  %v572_v36 = vld [vmem:[#allocation10 + $0x44] sm:$0xf0]  ;;  %v571_v37 = vld [vmem:[#allocation10 + $0x44] sm:$0xf] }
  0x21   :  { %v519_v38 = vld [vmem:[#allocation10 + $0x48] sm:$0xf0]  ;;  %v518_v39 = vor.u32 %v572_v36, %v517_v35  ;;  %v509_v41 = vld [vmem:[#allocation10 + $0x30] sm:$0xf]  ;;  %v570_v42 = vld [vmem:[#allocation10 + $0x34] sm:$0xf0] }
  0x22   :  { %v522_v40 = vor.u32 %v571_v37, %v519_v38  ;;  %v569_v43 = vld [vmem:[#allocation10 + $0x34] sm:$0xf]  ;;  %v511_v44 = vld [vmem:[#allocation10 + $0x38] sm:$0xf0]  ;;  %v510_v45 = vor.u32 %v570_v42, %v509_v41  ;;  %v501_v47 = vld [vmem:[#allocation10 + $0x20] sm:$0xf] }
  0x23   :  { %173 = vmatpush.bf16.msra.mxu0 %v551_v6  ;;  %371 = vmatpush.bf16.msra.mxu2 %v534_v27  ;;  %v514_v46 = vor.u32 %v569_v43, %v511_v44  ;;  %v568_v48 = vld [vmem:[#allocation10 + $0x24] sm:$0xf0]  ;;  %v567_v49 = vld [vmem:[#allocation10 + $0x24] sm:$0xf]  ;;  %v503_v50 = vld [vmem:[#allocation10 + $0x28] sm:$0xf0] }
  0x24   :  { %256 = vmatpush.bf16.msra.mxu1 %v559_v7  ;;  %384 = vmatpush.bf16.msra.mxu3 %v538_v28  ;;  %v502_v51 = vor.u32 %v568_v48, %v501_v47  ;;  %v506_v52 = vor.u32 %v567_v49, %v503_v50  ;;  %v589_v53 = vld [vmem:[%s819_s2] ss:$0 sm:$0xff]  ;;  %v493_v59 = vld [vmem:[#allocation10 + $0x10] sm:$0xf]  ;;  %v565_v61 = vld [vmem:[#allocation10 + $0x14] sm:$0xf] }
  0x25   :  { %v566_v60 = vld [vmem:[#allocation10 + $0x14] sm:$0xf0]  ;;  %v495_v63 = vld [vmem:[#allocation10 + $0x18] sm:$0xf0]  ;;  %v485_v1 = vld [vmem:[#allocation10] sm:$0xf] }
  0x26   :  { %v494_v62 = vor.u32 %v566_v60, %v493_v59  ;;  %v498_v0 = vor.u32 %v565_v61, %v495_v63  ;;  %v564_v2 = vld [vmem:[#allocation10 + $0x4] sm:$0xf0]  ;;  %v563_v3 = vld [vmem:[#allocation10 + $0x4] sm:$0xf]  ;;  %v487_v5 = vld [vmem:[#allocation10 + $0x8] sm:$0xf0] }
  0x27   :  { %174 = vmatpush.bf16.msra.mxu0 %v550_v8  ;;  %372 = vmatpush.bf16.msra.mxu2 %v526_v33  ;;  %v486_v4 = vor.u32 %v564_v2, %v485_v1  ;;  %v490_v6 = vor.u32 %v563_v3, %v487_v5  ;;  %v590_v7 = vld [vmem:[#allocation8] ss:$0 sm:$0xff] }
  0x28   :  { %257 = vmatpush.bf16.msra.mxu1 %v558_v9  ;;  %385 = vmatpush.bf16.msra.mxu3 %v530_v34 }
  0x2b   :  { %175 = vmatpush.bf16.msra.mxu0 %v549_v10  ;;  %373 = vmatpush.bf16.msra.mxu2 %v518_v39 }
  0x2c   :  { %258 = vmatpush.bf16.msra.mxu1 %v557_v11  ;;  %386 = vmatpush.bf16.msra.mxu3 %v522_v40 }
  0x2f   :  { %176 = vmatpush.bf16.msra.mxu0 %v548_v12  ;;  %374 = vmatpush.bf16.msra.mxu2 %v510_v45 }
  0x30   :  { %259 = vmatpush.bf16.msra.mxu1 %v556_v15  ;;  %387 = vmatpush.bf16.msra.mxu3 %v514_v46 }
  0x33   :  { %177 = vmatpush.bf16.msra.mxu0 %v547_v13  ;;  %375 = vmatpush.bf16.msra.mxu2 %v502_v51  ;;  %v284_v13 = vld [vmem:[%s823_s6] sm:$0x3] }
  0x34   :  { %260 = vmatpush.bf16.msra.mxu1 %v555_v16  ;;  %388 = vmatpush.bf16.msra.mxu3 %v506_v52  ;;  %v287_v15 = vperm.slane %v284_v13, 1 }
  0x36   :  { %178 = vmatmul.bf16.vlgmr.msra.gmra.mxu0 %v101_v14  ;;  %v286_v14 = vperm.slane %v284_v13, 0 }
  0x37   :  { %376 = vmatpush.bf16.msra.mxu2 %v494_v62 }
  0x38   :  { %389 = vmatpush.bf16.msra.mxu3 %v498_v0 }
  0x3b   :  { %377 = vmatpush.bf16.msra.mxu2 %v486_v4 }
  0x3c   :  { %390 = vmatpush.bf16.msra.mxu3 %v490_v6 }
  0xb3   :  { %v179_v54 = vpop.f32.mrf.mxu0 }
  0xb4   :  { %v180_v55 = vadd.f32 %v589_v53, %v179_v54 }
  0xb6   :  { %v183_v56 = vmax.f32 %v180_v55, 0.0 }
  0xb8   :  { %v184_v57 = vpack.c.bf16 %v183_v56, %v183_v56 }
  0xba   :  { %261 = vmatmul.bf16.vlgmr.msra.gmra.mxu1 %v184_v57 }
  0xbb   :  { %v181_v58 = vpop.f32.mrf.mxu0 }
 0x137   :  { %v262_v8 = vpop.f32.mrf.mxu1 }
 0x138   :  { %v263_v9 = vadd.f32 %v590_v7, %v262_v8 }
 0x13a   :  { %v266_v10 = vmax.f32 %v263_v9, 0.0 }
 0x13c   :  { %v267_v11 = vpack.c.bf16 %v266_v10, %v266_v10 }
 0x13e   :  { %378 = vmatmul.bf16.vlgmr.msra.gmra.mxu2 %v267_v11  ;;  %391 = vmatmul.bf16.vlgmr.msra.gmra.mxu3 %v267_v11 }
 0x13f   :  { %v264_v12 = vpop.f32.mrf.mxu1 }
 0x1c1   :  { %v379_v16 = vpop.f32.mrf.mxu2  ;;  %v392_v17 = vpop.f32.mrf.mxu3 }
 0x1c2   :  { %v380_v18 = vadd.f32 %v379_v16, %v286_v14  ;;  %v393_v19 = vadd.f32 %v392_v17, %v287_v15 }
 0x1c4   :  { %396 = vst [vmem:[#allocation11] sm:$0xff] %v380_v18  ;;  %v397_v20 = vmax.f32 %v393_v19, -20.0 }
 0x1c6   :  { %v398_v21 = vmin.f32 %v397_v20, 2.0 }
 0x1c8   :  { %399 = vst [vmem:[#allocation11 + $0x8] sm:$0xff] %v398_v21 }
 0x1c9   :  { %v381_v22 = vpop.f32.mrf.mxu2  ;;  %v394_v23 = vpop.f32.mrf.mxu3  ;;  %410 = dma.vmem_to_hbm [thread:$0]  %s406_s29, 256, %s408_s9, [#allocation4]  }
 0x1ca   :  { %741 = dma.done.wait [#allocation4], 256  }
 0x1cb   :  { %742 = vsyncadd [#allocation4], 4294967040 }
 0x1cc   :  { %415 = vsyncpa [#allocation3], 1 }
 0x1cd   :  { %416 = vsyncpa [#allocation6], 1 }
 0x1ce   :  { %417 = vsyncpa [#allocation9], 1 }
 0x1cf   :  { %418 = vsyncpa [#allocation4], 1 }

</bundles_post_ra>
